<compile_context>
chip_gen: v7x
topology: tpu7x:2x2x1
jax: 0.10.0
libtpu: 0.0.40
codegen_flags: <defaults>
</compile_context>

<pallas_src>
import numpy as np
import jax
import jax.numpy as jnp
from jax.experimental import pallas as pl
from jax.experimental.pallas import tpu as pltpu


def build_relative_position_index(window_size):
    """Exact NumPy port of the PyTorch __init__ index construction."""
    Wh, Ww = window_size
    num_relative_distance = (2 * Wh - 1) * (2 * Ww - 1) + 3

    coords_h = np.arange(Wh)
    coords_w = np.arange(Ww)
    # torch.meshgrid default is 'ij' indexing
    coords = np.stack(np.meshgrid(coords_h, coords_w, indexing="ij"))   # (2, Wh, Ww)
    coords_flatten = coords.reshape(2, -1)                               # (2, Wh*Ww)
    relative_coords = coords_flatten[:, :, None] - coords_flatten[:, None, :]  # (2, N, N)
    relative_coords = relative_coords.transpose(1, 2, 0).copy()          # (N, N, 2)
    relative_coords[:, :, 0] += Wh - 1
    relative_coords[:, :, 1] += Ww - 1
    relative_coords[:, :, 0] *= 2 * Ww - 1

    N = Wh * Ww
    rpi = np.zeros((N + 1, N + 1), dtype=np.int64)
    rpi[1:, 1:] = relative_coords.sum(-1)
    rpi[0, 0:] = num_relative_distance - 3
    rpi[0:, 0] = num_relative_distance - 2
    rpi[0, 0] = num_relative_distance - 1
    return rpi.astype(np.int32), num_relative_distance


def _round_up(x, m):
    return ((x + m - 1) // m) * m


def _rpb_kernel(idx_ref, table_t_ref, out_ref):
    # idx_ref:     (1, BLL)  int32   lane-major index slab (pad lanes = -1)
    # table_t_ref: (H, D)    float32 pre-transposed bias table
    # out_ref:     (H, BLL)  float32 final layout -> no transpose needed
    idx = idx_ref[...]                                        # (1, BLL)
    D = table_t_ref.shape[1]
    BLL = idx.shape[1]

    # one_hot[d, k] = (d == idx[k]); idx broadcasts along sublanes for free.
    iota_d = jax.lax.broadcasted_iota(jnp.int32, (D, BLL), 0)
    one_hot = (iota_d == idx).astype(jnp.float32)             # (D, BLL)

    # Gather-as-matmul on the MXU, result produced directly in (H, BLL).
    out_ref[...] = jnp.dot(table_t_ref[...], one_hot,
                           preferred_element_type=jnp.float32)


def relative_position_bias_forward(table, rel_pos_index, window_size, num_heads,
                                   block_ll=512):
    """Pallas-backed forward. Returns (num_heads, L, L) float32.

    table         : (num_relative_distance, num_heads) float32
    rel_pos_index : (L, L) int32 with L = Wh*Ww + 1
    block_ll      : LL tile on the lane axis; multiple of 128 (ideally 256).
    """
    L = window_size[0] * window_size[1] + 1
    LL = L * L
    D = table.shape[0]

    # Pad LL up to a multiple of the block so every store is a full-width
    # unmasked vst; pad indices are -1 -> all-zero one-hot columns.
    ll_pad = _round_up(LL, block_ll)
    idx_flat = rel_pos_index.reshape(1, LL).astype(jnp.int32)
    idx_pad = jnp.full((1, ll_pad), -1, dtype=jnp.int32).at[:, :LL].set(idx_flat)

    # Pre-transpose the table (glue; tiny) so the kernel needs no transpose.
    table_t = jnp.asarray(table, jnp.float32).T               # (H, D)

    grid = (ll_pad // block_ll,)
    out_pad = pl.pallas_call(
        _rpb_kernel,
        out_shape=jax.ShapeDtypeStruct((num_heads, ll_pad), jnp.float32),
        grid=grid,
        in_specs=[
            pl.BlockSpec((1, block_ll), lambda i: (0, i)),          # index slab
            pl.BlockSpec((num_heads, D), lambda i: (0, 0)),         # whole table
        ],
        out_specs=pl.BlockSpec((num_heads, block_ll), lambda i: (0, i)),
        compiler_params=pltpu.CompilerParams(
            dimension_semantics=("parallel",),
        ),
    )(idx_pad, table_t)

    # Slice off the lane padding and reshape (pure metadata).
    return out_pad[:, :LL].reshape(num_heads, L, L)


if __name__ == "__main__":
    window_size = (4, 4)
    num_heads = 8

    rpi_np, num_relative_distance = build_relative_position_index(window_size)
    L = window_size[0] * window_size[1] + 1          # 17
    assert rpi_np.shape == (L, L)
    assert num_relative_distance == (2 * 4 - 1) * (2 * 4 - 1) + 3   # 52

    # Deterministic parameter init (PyTorch inits the table to zeros, which is
    # a degenerate test; use a fixed random table instead).
    key = jax.random.PRNGKey(0)
    table = jax.random.normal(key, (num_relative_distance, num_heads),
                              dtype=jnp.float32)

    rel_pos_index = jnp.asarray(rpi_np, dtype=jnp.int32)     # (L, L)

    # block_ll=256 here exercises a 2-step grid plus the pad/slice path
    # (LL = 289 -> padded to 512). Default 512 is the production choice.
    out = relative_position_bias_forward(table, rel_pos_index, window_size,
                                         num_heads, block_ll=256)
    out = jax.block_until_ready(out)

    # Pure-JAX reference: table[index.view(-1)].view(L, L, H).permute(2, 0, 1)
    ref = jnp.take(table, jnp.asarray(rpi_np.reshape(-1)), axis=0)
    ref = ref.reshape(L, L, num_heads).transpose(2, 0, 1)

    np.testing.assert_allclose(np.asarray(out), np.asarray(ref),
                               rtol=1e-6, atol=1e-6)
    assert out.shape == (num_heads, L, L)
    assert out.dtype == jnp.float32

    print("KERNEL_OK")
</pallas_src>

<mosaic_0001>
module attributes {stable_mosaic.version = 11 : i64} {
  func.func @_rpb_kernel(%arg0: i32, %arg1: memref<1x256xi32, #tpu.memory_space<vmem>>, %arg2: memref<8x52xf32, #tpu.memory_space<vmem>>, %arg3: memref<8x256xf32, #tpu.memory_space<vmem>>) attributes {dimension_semantics = [#tpu.dimension_semantics<parallel>], iteration_bounds = array<i64: 2>, scalar_prefetch = 0 : i64, scratch_operands = 0 : i64, tpu.core_type = #tpu.core_type<tc>, window_params = [{transform_indices = @transform_0, window_bounds = array<i64: 1, 256>}, {pipeline_mode = #tpu.pipeline_mode<synchronous>, transform_indices = @transform_1, window_bounds = array<i64: 8, 52>}, {transform_indices = @transform_2, window_bounds = array<i64: 8, 256>}]} {
    %c0 = arith.constant 0 : index
    %c0_0 = arith.constant 0 : index
    %0 = vector.load %arg1[%c0, %c0_0] : memref<1x256xi32, #tpu.memory_space<vmem>>, vector<1x256xi32>
    %1 = tpu.iota {dimensions = array<i32: 0>} : vector<52x256xi32>
    %2 = vector.broadcast %0 : vector<1x256xi32> to vector<52x256xi32>
    %3 = arith.cmpi eq, %1, %2 : vector<52x256xi32>
    %4 = arith.extui %3 : vector<52x256xi1> to vector<52x256xi32>
    %5 = arith.sitofp %4 : vector<52x256xi32> to vector<52x256xf32>
    %c0_1 = arith.constant 0 : index
    %c0_2 = arith.constant 0 : index
    %6 = vector.load %arg2[%c0_1, %c0_2] : memref<8x52xf32, #tpu.memory_space<vmem>>, vector<8x52xf32>
    %cst = arith.constant dense<0.000000e+00> : vector<8x256xf32>
    %7 = tpu.matmul %6, %5, %cst {dimension_numbers = #tpu.dot_dimension_numbers<[1], [0], [0], [1], [0, 0, 1, 1], [], []>} : vector<8x52xf32>, vector<52x256xf32>, vector<8x256xf32> -> vector<8x256xf32>
    %c0_3 = arith.constant 0 : index
    %c0_4 = arith.constant 0 : index
    %8 = vector.load %arg3[%c0_3, %c0_4] : memref<8x256xf32, #tpu.memory_space<vmem>>, vector<8x256xf32>
    tpu.vector_store %arg3[%c0_3, %c0_4], %7 {strides = array<i32>} : memref<8x256xf32, #tpu.memory_space<vmem>>, vector<8x256xf32>,
    return
  }
  func.func @transform_0(%arg0: i32) -> (i32, i32) {
    %c0_i32 = arith.constant 0 : i32
    %c0_i32_0 = arith.constant 0 : i32
    return %c0_i32, %arg0 : i32, i32
  }
  func.func @transform_1(%arg0: i32) -> (i32, i32) {
    %c0_i32 = arith.constant 0 : i32
    %c0_i32_0 = arith.constant 0 : i32
    %c0_i32_1 = arith.constant 0 : i32
    return %c0_i32, %c0_i32_0 : i32, i32
  }
  func.func @transform_2(%arg0: i32) -> (i32, i32) {
    %c0_i32 = arith.constant 0 : i32
    %c0_i32_0 = arith.constant 0 : i32
    return %c0_i32, %arg0 : i32, i32
  }
}

</mosaic_0001>

<bundles_post_ra>
// kernel: tpu_custom_call.1
= control target key start
LH: loop header
LB: loop body
LE: loop exit
PB: predicated region body
PF: predicated region fallthrough
CT: control target
= control target key end

     0   :  { %7 = vsyncpa [#allocation3], 0  ;;  %s884_s0 = inlined_call_operand.hbm [shape: s32[1,512], index: 0, kind: input, shape index: {}]   ;;  %s885_s1 = inlined_call_operand.hbm [shape: f32[8,52], index: 1, kind: input, shape index: {}]   ;;  %s886_s2 = inlined_call_operand.hbm [shape: f32[8,512], index: 2, kind: output, shape index: {}]  }
   0x1   :  { %9 = vsyncpa [#allocation3 + $0x1], 0 }
   0x2   :  { %10 = vsyncpa [#allocation6], 0 }
   0x3   :  { %11 = vsyncpa [#allocation4], 0 }
   0x4   :  { %13 = vsyncpa [#allocation4 + $0x1], 0  ;;  %s682_s9 = smov 0   ;;  %s684_s10 = smov 0  }
   0x5   :  { %s686_s11 = smov 0   ;;  %s688_s12 = smov 0  }
   0x6 LB: > { %s703_s13 = sadd.s32 4294967295, %s660_s12   ;;  %s414_s14 = sadd.s32 4294967294, %s660_s12   ;;  %s660_s12 = sphi %s688_s12, %s910_s12   ;;  %s656_s11 = sphi %s686_s11, %s909_s11   ;;  %s652_s10 = sphi %s684_s10, %s908_s10   ;;  %s648_s9 = sphi %s682_s9, %s907_s9  }
   0x7   : > { %p39_p0 = scmp.ne.s32.totalorder %s652_s10, %s648_s9  ;;  %p887_p1 = scmp.eq.s32.totalorder %s703_s13, 0 }
   0x8   : > { %p90_p3 = scmp.eq.s32.totalorder %s414_s14, 1  ;;  %p415_p5 = scmp.ge.s32.totalorder %s660_s12, 1 }
   0x9   : > { %p712_p4 = por %p887_p1, %p39_p0  ;;  %p97_p7 = scmp.lt.s32.totalorder %s660_s12, 3 }
   0xa   : > { %p717_p6 = por %p90_p3, %p39_p0  ;;  %s662_s18 = smov [#allocation5]  }
   0xb   : > { %s890_s15 = scalar_select %p712_p4, 1, 0 }
   0xc   : > { %s891_s16 = scalar_select %p717_p6, 1, 0 }
   0xd   : > { %p722_p8 = pnand %p415_p5, %p97_p7  ;;  %s110_s19 = sshll.u32 %s662_s18, 4  ;;  %s111_s19 = int_to_ptr.vmem [resolvable:$true] %s110_s19 }
   0xe   : > { %s730_s20 = sadd.s32 1, %s660_s12   ;;  %s26_s24 = sadd.s32 1, %s656_s11 }
   0xf   : > { %s892_s17 = scalar_select %p722_p8, 1, 0 }
  0x10   : > { %p481_p10 = pneg %p722_p8  ;;  %s23_s22 = ssub.s32 %s660_s12, %s730_s20 }
  0x11   : > { %p740_p12 = scmp.eq.s32.totalorder %s23_s22, 0  ;;  %s532_s27 = scalar_lea.hbm %s885_s1, 128 }
  0x12   : > { %p734_p11 = pnand %p481_p10, %p887_p1  ;;  %p533_p0 = scmp.ne.s32.totalorder %s885_s1, %s532_s27 }
  0x13   : > { %s894_s23 = scalar_select %p740_p12, 1, 0 }
  0x14   : > { %p534_p3 = pneg %p734_p11  ;;  %p539_p10 = scmp.lt.u32.totalorder %s532_s27, %s885_s1 }
  0x16   : > { %p535_p5 = pnand %p534_p3, %p533_p0 }
  0x18   : > { %p536_p7 = pneg %p535_p5 }
  0x1a   : > { %p541_p9 = pnand %p539_p10, %p536_p7 }
  0x1c   : > { %544 = shalt.err (!%p541_p9)
}
  0x1d   : > { %s545_s4 = scalar_lea.vmem %s111_s19, 128  ;;  %p553_p6 = scmp.lt.s32.totalorder %s111_s19, %s111_s19 }
  0x1e   : > { %p546_p1 = scmp.ne.s32.totalorder %s111_s19, %s545_s4  ;;  %p554_p4 = scmp.lt.s32.totalorder %s545_s4, %s545_s4 }
  0x20   : > { %p548_p2 = pnand %p546_p1, %p534_p3  ;;  %p555_p8 = por %p554_p4, %p553_p6 }
  0x22   : > { %p549_p13 = pneg %p548_p2 }
  0x24   : > { %p556_p12 = pnand %p555_p8, %p549_p13 }
  0x26   : > { %559 = shalt.err (!%p556_p12)
}
  0x27   : > { %484 = dma.hbm_to_vmem [thread:$0]  (!%p734_p11), %s885_s1, 128, %s111_s19, [#allocation6]  }
  0x28   : > { %p895_p1 = scmp.ne.s32.totalorder %s894_s23, 0  ;;  %p34_p2 = scmp.eq.s32.totalorder %s660_s12, 0 }
  0x29   : > { %p896_p4 = scmp.ne.s32.totalorder %s656_s11, %s652_s10  ;;  %p897_p6 = scmp.eq.s32.totalorder %s703_s13, 1 }
  0x2a   : > { %s766_s7 = scalar_select %p895_p1, %s656_s11, %s26_s24  }
  0x2b   : > { %p774_p8 = por %p897_p6, %p896_p4  ;;  %p494_p9 = scmp.lt.s32.totalorder %s660_s12, 2 }
  0x2c   : > { %s121_s14 = sand.u32 1, %s656_s11   ;;  %p899_p12 = pmov %p896_p4 }
  0x2d   : > { %s418_s18 = sshll.u32 %s121_s14, 1  ;;  %s459_s21 = sshll.u32 %s660_s12, 5 }
  0x2e   : > { %p35_p13 = por %p34_p2, %p899_p12  ;;  %s787_s19 = scalar_lea.hbm %s884_s0, %s459_s21 }
  0x2f   : > { %s125_s23 = scalar_lea.vmem [#allocation2], %s418_s18  ;;  %s122_s27 = scalar_lea.sflag [#allocation3], %s121_s14 }
  0x30   : > { %s133_s24 = sshll.u32 %s125_s23, 4  ;;  %p789_p11 = pnand %p494_p9, %p35_p13  ;;  %s793_s24 = int_to_ptr.vmem [resolvable:$true] %s133_s24 }
  0x31   : > { %s560_s28 = scalar_lea.hbm %s787_s19, 32  ;;  %s565_s3 = scalar_lea.hbm %s884_s0, 64 }
  0x32   : > { %p561_p0 = scmp.ne.s32.totalorder %s787_s19, %s560_s28  ;;  %p562_p3 = pneg %p789_p11 }
  0x33   : > { %p566_p10 = scmp.lt.u32.totalorder %s787_s19, %s884_s0  ;;  %p567_p1 = scmp.lt.u32.totalorder %s565_s3, %s560_s28 }
  0x34   : > { %p563_p5 = pnand %p562_p3, %p561_p0  ;;  %p569_p4 = scmp.lt.u32.totalorder %s560_s28, %s787_s19 }
  0x35   : > { %p568_p2 = por %p567_p1, %p566_p10 }
  0x36   : > { %p564_p7 = pneg %p563_p5 }
  0x37   : > { %p570_p6 = por %p569_p4, %p568_p2 }
  0x39   : > { %p571_p9 = pnand %p570_p6, %p564_p7 }
  0x3b   : > { %574 = shalt.err (!%p571_p9)
}
  0x3c   : > { %s575_s6 = scalar_lea.vmem %s793_s24, 32  ;;  %s663_s14 = smov [#allocation2]  }
  0x3d   : > { %p576_p12 = scmp.ne.s32.totalorder %s793_s24, %s575_s6  ;;  %s580_s18 = sshll.u32 %s663_s14, 4  ;;  %s581_s18 = int_to_ptr.vmem [resolvable:$false] %s580_s18 }
  0x3e   : > { %s582_s21 = scalar_lea.vmem %s581_s18, 64  ;;  %p583_p5 = scmp.lt.s32.totalorder %s793_s24, %s581_s18 }
  0x3f   : > { %p578_p13 = pnand %p576_p12, %p562_p3  ;;  %p584_p10 = scmp.lt.s32.totalorder %s582_s21, %s575_s6 }
  0x41   : > { %p579_p0 = pneg %p578_p13  ;;  %p585_p1 = por %p584_p10, %p583_p5 }
  0x43   : > { %p586_p2 = pnand %p585_p1, %p579_p0 }
  0x45   : > { %589 = shalt.err (!%p586_p2)
}
  0x46   : > { %488 = dma.hbm_to_vmem [thread:$0]  (!%p789_p11), %s787_s19, 32, %s793_s24, %s122_s27  }
  0x47   : > { %p901_p7 = scmp.ne.s32.totalorder %s892_s17, 0 }
  0x48   : > { %s823_s22 = sand.u32 (!%p901_p7), 1, %s652_s10   ;;  %p902_p3 = scmp.ne.s32.totalorder (!%p901_p7), %s890_s15, 0 }
  0x49   : > { %142 = sbr.rel (%p901_p7) target bundleno = 335 (0x14f), region = 28  ;;  %s422_s25 = sshll.u32 (!%p901_p7), %s823_s22, 1 }
  0x4a   : > { %s145_s23 = scalar_lea.sflag (!%p901_p7), [#allocation3], %s823_s22  ;;  %s148_s28 = scalar_lea.vmem (!%p901_p7), [#allocation2], %s422_s25 }
  0x50   : > { %635 = dma.done.wait (%p902_p3), %s145_s23, 32  }
  0x51   : > { %637 = vsyncadd (%p902_p3), %s145_s23, 4294967264  ;;  %p903_p4 = scmp.eq.s32.totalorder %s703_s13, 0 }
  0x53   : > { %639 = dma.done.wait (%p903_p4), [#allocation6], 128   ;;  %p904_p11 = pmov %p903_p4 }
  0x54   : > { %v176_v0 = vlaneseq  ;;  %v664_v1 = vmov 0.0   ;;  %v175_v6 = vld [vmem:[%s148_s28] sm:$0x3]  ;;  %v665_v13 = vmov 1.0|1.0   ;;  %v234_v17 = vld [vmem:[#allocation5] sm:$0xff] }
  0x55   : > { %641 = vsyncadd (%p904_p11), [#allocation6], 4294967168  ;;  %310 = vmatprep.mubr.f32.mxu0 %v664_v1  ;;  %s424_s15 = sshll.u32 %s823_s22, 4  ;;  %s460_s24 = sshll.u32 %s703_s13, 8 }
  0x56   : > { %v177_v2 = vshrl.u32 %v176_v0, 7  ;;  %s172_s17 = scalar_lea.vmem [#allocation7], %s424_s15  ;;  %s842_s29 = scalar_lea.hbm %s886_s2, %s460_s24 }
  0x57   : > { %s334_s19 = sshll.u32 %s172_s17, 4  ;;  %s320_s30 = scalar_lea.sflag [#allocation4], %s823_s22  ;;  %s837_s19 = int_to_ptr.vmem [resolvable:$true] %s334_s19 }
  0x58   : > { %v190_v3 = vsub.s32 1, %v177_v2  ;;  %v186_v4 = vsub.s32 0, %v177_v2  ;;  %v178_v5 = vadd.s32 8, %v177_v2  ;;  %v179_v7 = vadd.s32 16, %v177_v2  ;;  %s590_s3 = scalar_lea.vmem %s837_s19, 256  ;;  %s666_s13 = smov [#allocation7]  }
  0x59   : > { %v180_v8 = vadd.s32 24, %v177_v2  ;;  %v181_v11 = vadd.s32 32, %v177_v2  ;;  %v182_v12 = vadd.s32 40, %v177_v2  ;;  %v183_v14 = vadd.s32 48, %v177_v2  ;;  %p591_p6 = scmp.ne.s32.totalorder %s837_s19, %s590_s3  ;;  %s594_s4 = sshll.u32 %s666_s13, 4  ;;  %s595_s4 = int_to_ptr.vmem [resolvable:$false] %s594_s4 }
  0x5a   : > { %v191_v9 = vrot.slane %v175_v6, %v190_v3  ;;  %v187_v10 = vrot.slane %v175_v6, %v186_v4  ;;  %s596_s5 = scalar_lea.vmem %s595_s4, 512  ;;  %p597_p13 = scmp.lt.s32.totalorder %s837_s19, %s595_s4 }
  0x5b   : > { %p592_p9 = pnand %p591_p6, %p774_p8  ;;  %p598_p0 = scmp.lt.s32.totalorder %s596_s5, %s590_s3 }
  0x5c   : > { %vm193_vm0 = vcmp.eq.s32.totalorder %v177_v2, %v191_v9  ;;  %vm195_vm1 = vcmp.eq.s32.totalorder %v178_v5, %v191_v9  ;;  %vm192_vm2 = vcmp.eq.s32.totalorder %v177_v2, %v187_v10  ;;  %vm194_vm3 = vcmp.eq.s32.totalorder %v178_v5, %v187_v10 }
  0x5d   : > { %vm461_vm4 = vmpackc.low %vm195_vm1, %vm193_vm0  ;;  %vm197_vm5 = vcmp.eq.s32.totalorder %v179_v7, %v191_v9  ;;  %vm199_vm6 = vcmp.eq.s32.totalorder %v180_v8, %v191_v9  ;;  %vm196_vm7 = vcmp.eq.s32.totalorder %v179_v7, %v187_v10  ;;  %vm198_vm8 = vcmp.eq.s32.totalorder %v180_v8, %v187_v10  ;;  %p593_p12 = pneg %p592_p9  ;;  %p599_p5 = por %p598_p0, %p597_p13 }
  0x5e   : > { %462 = vmatprep.subr.msk.bf16.mxu0 %vm461_vm4, %v665_v13  ;;  %vm463_vm9 = vmpackc.low %vm194_vm3, %vm192_vm2  ;;  %vm201_vm10 = vcmp.eq.s32.totalorder %v181_v11, %v191_v9  ;;  %vm203_vm11 = vcmp.eq.s32.totalorder %v182_v12, %v191_v9  ;;  %vm200_vm15 = vcmp.eq.s32.totalorder %v181_v11, %v187_v10  ;;  %vm202_vm0 = vcmp.eq.s32.totalorder %v182_v12, %v187_v10 }
  0x5f   : > { %464 = vmatpush1.bf16.msk.msra.mxu0 %vm463_vm9, %v665_v13  ;;  %vm465_vm12 = vmpackc.low %vm199_vm6, %vm197_vm5  ;;  %vm205_vm1 = vcmp.eq.s32.totalorder %v183_v14, %v191_v9  ;;  %vm239_vm2 = vcmask 1043456   ;;  %vm204_vm3 = vcmp.eq.s32.totalorder %v183_v14, %v187_v10  ;;  %vm235_vm5 = vcmask 424960   ;;  %p600_p10 = pnand %p599_p5, %p593_p12 }
  0x60   : > { %466 = vmatprep.subr.msk.bf16.mxu0 %vm465_vm12, %v665_v13  ;;  %vm467_vm13 = vmpackc.low %vm198_vm8, %vm196_vm7  ;;  %v438_v15 = vsel %vm205_vm1, 1.0, %v664_v1  ;;  %v437_v16 = vsel %vm204_vm3, 1.0, %v664_v1 }
  0x61   : > { %vm469_vm14 = vmpackc.low %vm203_vm11, %vm201_vm10 }
  0x62   : > { %vm471_vm4 = vmpackc.low %vm202_vm0, %vm200_vm15 }
  0x63   : > { %468 = vmatpush1.bf16.msk.msra.mxu0 %vm467_vm13, %v665_v13 }
  0x64   : > { %470 = vmatprep.subr.msk.bf16.mxu0 %vm469_vm14, %v665_v13 }
  0x67   : > { %472 = vmatpush1.bf16.msk.msra.mxu0 %vm471_vm4, %v665_v13 }
  0x68   : > { %451 = vmatprep.subr.msk.mxu0 %vm239_vm2, %v438_v15 }
  0x6b   : > { %452 = vmatpush1.msk.msra.mxu0 %vm239_vm2, %v437_v16 }
  0x6c   : > { %453 = vmatmul.mubr.msk.f32.vlgmr.msra.gmra.mrb[0].mxu0 %vm235_vm5, %v234_v17 }
 0x13f   : > { %v312_v18 = vpop.f32.mrb[0].mxu0 }
 0x140   : > { %317 = vst [vmem:[%s172_s17] sm:$0xff] %v312_v18  ;;  %v314_v19 = vpop.f32.mrb[1].mxu0 }
 0x141   : > { %318 = vst [vmem:[%s172_s17 + $0x8] sm:$0xff] %v314_v19 }
 0x142   : > { %603 = shalt.err (!%p600_p10)
}
 0x143   : > { %s604_s6 = scalar_lea.hbm %s842_s29, 256  ;;  %s608_s21 = scalar_lea.hbm %s886_s2, 512 }
 0x144   : > { %p605_p1 = scmp.ne.s32.totalorder %s842_s29, %s604_s6  ;;  %p609_p3 = scmp.lt.u32.totalorder %s842_s29, %s886_s2 }
 0x145   : > { %p610_p4 = scmp.lt.u32.totalorder %s608_s21, %s604_s6  ;;  %p612_p6 = scmp.lt.u32.totalorder %s604_s6, %s842_s29 }
 0x146   : > { %p606_p2 = pnand %p605_p1, %p774_p8 }
 0x147   : > { %p611_p11 = por %p610_p4, %p609_p3 }
 0x148   : > { %p607_p7 = pneg %p606_p2 }
 0x149   : > { %p613_p9 = por %p612_p6, %p611_p11 }
 0x14b   : > { %p614_p12 = pnand %p613_p9, %p607_p7 }
 0x14d   : > { %617 = shalt.err (!%p614_p12)
}
 0x14e   : > { %479 = dma.vmem_to_hbm [thread:$0]  (%p774_p8), %s837_s19, 256, %s842_s29, %s320_s30  }
 0x14f PF: > { %s346_s23 = sand.u32 1, %s648_s9   ;;  %p905_p13 = scmp.ne.s32.totalorder %s891_s16, 0 }
 0x150   : > { %p906_p0 = scmp.ge.s32.totalorder %s660_s12, 2  ;;  %s347_s28 = scalar_lea.sflag [#allocation4], %s346_s23 }
 0x152   : > { %p490_p5 = pnand %p906_p0, %p905_p13 }
 0x154   : > { %643 = dma.done.wait (!%p490_p5), %s347_s28, 256  }
 0x155   : > { %645 = vsyncadd (!%p490_p5), %s347_s28, 4294967040  ;;  %p16_p10 = scmp.ge.s32.totalorder %s730_s20, 4   ;;  %s907_s9 = smov %s652_s10 }
 0x156   : > { %s908_s10 = smov %s656_s11  ;;  %s909_s11 = smov %s766_s7 }
 0x157   : > { %s910_s12 = smov %s730_s20  ;;  %18 = sbr.rel (!%p16_p10) target bundleno = 6 (0x6), region = 77 }
 0x15e   :  { %352 = vsyncpa [#allocation3], 1 }
 0x15f   :  { %354 = vsyncpa [#allocation3 + $0x1], 1 }
 0x160   :  { %355 = vsyncpa [#allocation6], 1 }
 0x161   :  { %356 = vsyncpa [#allocation4], 1 }
 0x162   :  { %358 = vsyncpa [#allocation4 + $0x1], 1 }

</bundles_post_ra>
